<compile_context>
chip_gen: v7x
topology: tpu7x:2x2x1
jax: 0.10.0
libtpu: 0.0.40
codegen_flags: <defaults>
</compile_context>

<pallas_src>
import jax
import jax.numpy as jnp
from jax.experimental import pallas as pl
from jax.experimental.pallas import tpu as pltpu


def _phrase_attention_kernel(out_ref, emb_ref, lab_ref, w_ref,
                             atten_ref, wemb_ref):
    # out_ref  : (Bb, S, H)   emb_ref : (Bb, S, E)   lab_ref : (Bb, S) int32
    # w_ref    : (1, 1, H)
    # atten_ref: (Bb, S)      wemb_ref: (Bb, E)
    x = out_ref[...].astype(jnp.float32)                  # (Bb, S, H)
    w = w_ref[...].astype(jnp.float32)                    # (1, 1, H)

    # cxt_score = fc(output).squeeze(2): VPU multiply + lane (H) reduction,
    # keeping the score lane-dense in S.  The fc bias is a single scalar per
    # row and cancels under softmax, so it is not applied.
    # TODO(synk): if a bundle dump shows the multiply materializing a
    # (Bb,S,H) temporary, chunk H with an accumulating fori_loop.
    score = jnp.sum(x * w, axis=-1)                        # (Bb, S)

    # softmax over S, then padding mask + renorm, collapsed into a single
    # normalization: atten = exp(s - max) * mask / sum(exp(s - max) * mask).
    m = jnp.max(score, axis=-1, keepdims=True)             # (Bb, 1)
    p = jnp.exp(score - m)                                  # (Bb, S)
    mask = (lab_ref[...] != 0).astype(jnp.float32)          # (Bb, S)
    num = p * mask
    denom = jnp.sum(num, axis=-1, keepdims=True)             # (Bb, 1)
    # NOTE: all-padding rows divide by zero (NaN), mirroring the PyTorch module.
    atten = num / denom                                      # (Bb, S)
    atten_ref[...] = atten.astype(atten_ref.dtype)

    # weighted_emb = bmm(atten.unsqueeze(1), embed).squeeze(1)
    # Batched MXU contraction over S: lhs (Bb,1,S) has S on lanes, rhs
    # (Bb,S,E) has S on sublanes -> no relayout of atten, no materialized
    # (Bb,S,E) broadcast product.
    e = emb_ref[...].astype(jnp.float32)                    # (Bb, S, E)
    wemb = jnp.einsum('bqs,bse->bqe', atten[:, None, :], e,
                      preferred_element_type=jnp.float32)    # (Bb, 1, E)
    wemb_ref[...] = wemb[:, 0, :].astype(wemb_ref.dtype)


def _round_up(x, m):
    return ((x + m - 1) // m) * m


def _vmem_capacity_bytes():
    try:
        return int(pltpu.get_tpu_info().vmem_capacity_bytes)
    except Exception:
        return 64 << 20        # conservative fallback: v7x has 64 MiB per TC


def _choose_block_b(B, S, H, E, target_bytes):
    """Batch block so the COMBINED (output+embed) f32 input tile per grid step
    is ~target_bytes, with >= 2 grid steps whenever B >= 16 (keeps both v7x
    TensorCores busy via the 'parallel' axis)."""
    per_row = 4 * S * (H + E)            # BOTH big inputs, one batch row, f32
    if B * per_row <= target_bytes:
        if B >= 16:
            return min(_round_up(pl.cdiv(B, 2), 8), B)
        return B                          # tiny: one step, full-array blocks
    bb = (target_bytes // max(per_row, 1)) // 8 * 8
    bb = int(min(max(bb, 8), B))
    if bb >= B and B >= 16:
        bb = min(_round_up(pl.cdiv(B, 2), 8), B)
    # Rebalance so the last block is not mostly padding.
    nsteps = pl.cdiv(B, bb)
    if nsteps > 1:
        bb = min(_round_up(pl.cdiv(B, nsteps), 8), bb)
    # TODO(synk): if a single batch row exceeds ~target_bytes, S would also
    # need to be blocked (streaming softmax + wemb accumulation); not needed
    # for realistic PhraseAttention shapes.
    return bb


def phrase_attention(output, embed, input_labels, fc_weight, fc_bias=None, *,
                     block_b=None):
    """output: (B,S,H), embed: (B,S,E) (f32 or bf16; upcast in-kernel),
    input_labels: (B,S) int, fc_weight: (1,H) (nn.Linear(H,1).weight),
    fc_bias: (1,) scalar bias — cancels exactly under softmax."""
    del fc_bias  # single scalar shared across the softmax axis -> cancels
    B, S, H = output.shape
    _, _, E = embed.shape

    vmem_cap = _vmem_capacity_bytes()
    # Combined input bytes per grid step: multi-MiB tiles amortize the
    # ~0.35 us per-step overhead; capped by the generation's VMEM (v7x: 64 MiB).
    target_bytes = max(2 << 20, min(8 << 20, vmem_cap // 10))
    bb = block_b if block_b is not None else _choose_block_b(B, S, H, E,
                                                             target_bytes)
    grid = (pl.cdiv(B, bb),)

    labels2 = input_labels.astype(jnp.int32)               # (B, S), lane-dense
    w_row = fc_weight.reshape(1, 1, H).astype(jnp.float32)

    # Explicit VMEM budget: 2x double-buffered inputs/outputs + ~1 tile-sized
    # f32 intermediate slab for the score/softmax path + headroom.
    in_tile = 4 * bb * S * (H + E) + 4 * bb * S + 4 * H
    out_tile = 4 * bb * (S + E)
    interm = 4 * bb * S * (H + E)
    vmem_bytes = int(2 * (in_tile + out_tile) + interm + (4 << 20))
    vmem_bytes = int(min(max(vmem_bytes, 16 << 20), (vmem_cap * 7) // 8))

    atten, weighted_emb = pl.pallas_call(
        _phrase_attention_kernel,
        out_shape=(
            jax.ShapeDtypeStruct((B, S), jnp.float32),
            jax.ShapeDtypeStruct((B, E), jnp.float32),
        ),
        grid_spec=pltpu.PrefetchScalarGridSpec(
            num_scalar_prefetch=0,
            grid=grid,
            in_specs=[
                pl.BlockSpec((bb, S, H), lambda i: (i, 0, 0)),   # output
                pl.BlockSpec((bb, S, E), lambda i: (i, 0, 0)),   # embed
                pl.BlockSpec((bb, S), lambda i: (i, 0)),         # labels
                pl.BlockSpec((1, 1, H), lambda i: (0, 0, 0)),    # fc weight row
            ],
            out_specs=[
                pl.BlockSpec((bb, S), lambda i: (i, 0)),         # atten
                pl.BlockSpec((bb, E), lambda i: (i, 0)),         # weighted_emb
            ],
        ),
        compiler_params=pltpu.CompilerParams(
            dimension_semantics=("parallel",),
            vmem_limit_bytes=vmem_bytes),
    )(output, embed, labels2, w_row)

    return atten, weighted_emb


def _reference(output, embed, input_labels, fc_weight, fc_bias):
    # Pure-JAX reference mirroring the PyTorch forward (bias included).
    cxt_score = jnp.einsum('bsh,h->bs', output, fc_weight[0]) + fc_bias[0]
    atten = jax.nn.softmax(cxt_score, axis=1)
    is_not_zero = (input_labels != 0).astype(jnp.float32)
    atten = atten * is_not_zero
    atten = atten / atten.sum(axis=1, keepdims=True)
    weighted_emb = jnp.einsum('bs,bse->be', atten, embed)
    return atten, weighted_emb


if __name__ == "__main__":
    key = jax.random.PRNGKey(0)

    def run_case(B, S, H, E, block_b=None):
        ks = jax.random.split(jax.random.fold_in(key, B * 1000 + S), 5)
        output = jax.random.normal(ks[0], (B, S, H), dtype=jnp.float32)
        embed = jax.random.normal(ks[1], (B, S, E), dtype=jnp.float32)
        # labels with some zeros (padding) but at least one nonzero per row
        input_labels = jax.random.randint(ks[2], (B, S), 0, 5, dtype=jnp.int32)
        input_labels = input_labels.at[:, 0].set(1)
        fc_weight = jax.random.normal(ks[3], (1, H), dtype=jnp.float32) * 0.1
        fc_bias = jax.random.normal(ks[4], (1,), dtype=jnp.float32) * 0.1

        atten, wemb = phrase_attention(output, embed, input_labels,
                                       fc_weight, fc_bias, block_b=block_b)
        jax.block_until_ready((atten, wemb))

        atten_ref, wemb_ref = _reference(output, embed, input_labels,
                                         fc_weight, fc_bias)
        assert jnp.allclose(atten, atten_ref, atol=1e-5, rtol=1e-5), "atten mismatch"
        assert jnp.allclose(wemb, wemb_ref, atol=1e-5, rtol=1e-5), "weighted_emb mismatch"

    # Small shapes from the module spec: single grid step, full-array blocks.
    run_case(B=2, S=8, H=32, E=16)
    # Larger batch, explicit block: grid=3 with a ragged last block.
    run_case(B=20, S=16, H=64, E=32, block_b=8)
    # Same shapes with the auto heuristic: grid=2 (v7x megacore path), padded
    # last block exercises the masked-row / padded-write path.
    run_case(B=20, S=16, H=64, E=32)

    print("KERNEL_OK")
</pallas_src>

<mosaic_0001>
module attributes {stable_mosaic.version = 11 : i64} {
  func.func @_phrase_attention_kernel(%arg0: i32, %arg1: memref<2x8x32xf32, #tpu.memory_space<vmem>>, %arg2: memref<2x8x16xf32, #tpu.memory_space<vmem>>, %arg3: memref<2x8xi32, #tpu.memory_space<vmem>>, %arg4: memref<1x1x32xf32, #tpu.memory_space<vmem>>, %arg5: memref<2x8xf32, #tpu.memory_space<vmem>>, %arg6: memref<2x16xf32, #tpu.memory_space<vmem>>) attributes {dimension_semantics = [#tpu.dimension_semantics<parallel>], iteration_bounds = array<i64: 1>, scalar_prefetch = 0 : i64, scratch_operands = 0 : i64, tpu.core_type = #tpu.core_type<tc>, window_params = [{transform_indices = @transform_0, window_bounds = array<i64: 2, 8, 32>}, {transform_indices = @transform_1, window_bounds = array<i64: 2, 8, 16>}, {transform_indices = @transform_2, window_bounds = array<i64: 2, 8>}, {pipeline_mode = #tpu.pipeline_mode<synchronous>, transform_indices = @transform_3, window_bounds = array<i64: 1, 1, 32>}, {transform_indices = @transform_4, window_bounds = array<i64: 2, 8>}, {transform_indices = @transform_5, window_bounds = array<i64: 2, 16>}]} {
    %c0 = arith.constant 0 : index
    %c0_0 = arith.constant 0 : index
    %c0_1 = arith.constant 0 : index
    %0 = vector.load %arg1[%c0, %c0_0, %c0_1] : memref<2x8x32xf32, #tpu.memory_space<vmem>>, vector<2x8x32xf32>
    %c0_2 = arith.constant 0 : index
    %c0_3 = arith.constant 0 : index
    %c0_4 = arith.constant 0 : index
    %1 = vector.load %arg4[%c0_2, %c0_3, %c0_4] : memref<1x1x32xf32, #tpu.memory_space<vmem>>, vector<1x1x32xf32>
    %2 = vector.broadcast %1 : vector<1x1x32xf32> to vector<2x8x32xf32>
    %3 = arith.mulf %0, %2 : vector<2x8x32xf32>
    %cst = arith.constant dense<0.000000e+00> : vector<2x8xf32>
    %4 = vector.multi_reduction <add>, %3, %cst [2] : vector<2x8x32xf32> to vector<2x8xf32>
    %cst_5 = arith.constant dense<0xFF800000> : vector<2xf32>
    %5 = vector.multi_reduction <maximumf>, %4, %cst_5 [1] : vector<2x8xf32> to vector<2xf32>
    %6 = vector.shape_cast %5 : vector<2xf32> to vector<2x1xf32>
    %7 = vector.broadcast %6 : vector<2x1xf32> to vector<2x8xf32>
    %8 = arith.subf %4, %7 : vector<2x8xf32>
    %9 = math.exp %8 : vector<2x8xf32>
    %c0_6 = arith.constant 0 : index
    %c0_7 = arith.constant 0 : index
    %10 = vector.load %arg3[%c0_6, %c0_7] : memref<2x8xi32, #tpu.memory_space<vmem>>, vector<2x8xi32>
    %c0_i32 = arith.constant 0 : i32
    %11 = vector.broadcast %c0_i32 : i32 to vector<2x8xi32>
    %12 = arith.cmpi ne, %10, %11 : vector<2x8xi32>
    %13 = arith.extui %12 : vector<2x8xi1> to vector<2x8xi32>
    %14 = arith.sitofp %13 : vector<2x8xi32> to vector<2x8xf32>
    %15 = arith.mulf %9, %14 : vector<2x8xf32>
    %cst_8 = arith.constant dense<0.000000e+00> : vector<2xf32>
    %16 = vector.multi_reduction <add>, %15, %cst_8 [1] : vector<2x8xf32> to vector<2xf32>
    %17 = vector.shape_cast %16 : vector<2xf32> to vector<2x1xf32>
    %18 = vector.broadcast %17 : vector<2x1xf32> to vector<2x8xf32>
    %19 = arith.divf %15, %18 : vector<2x8xf32>
    %c0_9 = arith.constant 0 : index
    %c0_10 = arith.constant 0 : index
    %20 = vector.load %arg5[%c0_9, %c0_10] : memref<2x8xf32, #tpu.memory_space<vmem>>, vector<2x8xf32>
    tpu.vector_store %arg5[%c0_9, %c0_10], %19 {strides = array<i32>} : memref<2x8xf32, #tpu.memory_space<vmem>>, vector<2x8xf32>,
    %c0_11 = arith.constant 0 : index
    %c0_12 = arith.constant 0 : index
    %c0_13 = arith.constant 0 : index
    %21 = vector.load %arg2[%c0_11, %c0_12, %c0_13] : memref<2x8x16xf32, #tpu.memory_space<vmem>>, vector<2x8x16xf32>
    %22 = vector.shape_cast %19 : vector<2x8xf32> to vector<2x1x8xf32>
    "tpu.trace_start"() <{level = 10 : i32, message = "bqs,bse->bqe"}> : () -> ()
    %cst_14 = arith.constant dense<0.000000e+00> : vector<2x1x16xf32>
    %23 = tpu.matmul %22, %21, %cst_14 {dimension_numbers = #tpu.dot_dimension_numbers<[2], [1], [1], [2], [0, 0, 0, 1, 1, 2], [0], [0]>} : vector<2x1x8xf32>, vector<2x8x16xf32>, vector<2x1x16xf32> -> vector<2x1x16xf32>
    "tpu.trace_stop"() : () -> ()
    %24 = vector.shape_cast %23 : vector<2x1x16xf32> to vector<2x16xf32>
    %c0_15 = arith.constant 0 : index
    %c0_16 = arith.constant 0 : index
    %25 = vector.load %arg6[%c0_15, %c0_16] : memref<2x16xf32, #tpu.memory_space<vmem>>, vector<2x16xf32>
    tpu.vector_store %arg6[%c0_15, %c0_16], %24 {strides = array<i32>} : memref<2x16xf32, #tpu.memory_space<vmem>>, vector<2x16xf32>,
    return
  }
  func.func @transform_0(%arg0: i32) -> (i32, i32, i32) {
    %c0_i32 = arith.constant 0 : i32
    %c0_i32_0 = arith.constant 0 : i32
    %c0_i32_1 = arith.constant 0 : i32
    return %arg0, %c0_i32, %c0_i32_0 : i32, i32, i32
  }
  func.func @transform_1(%arg0: i32) -> (i32, i32, i32) {
    %c0_i32 = arith.constant 0 : i32
    %c0_i32_0 = arith.constant 0 : i32
    %c0_i32_1 = arith.constant 0 : i32
    return %arg0, %c0_i32, %c0_i32_0 : i32, i32, i32
  }
  func.func @transform_2(%arg0: i32) -> (i32, i32) {
    %c0_i32 = arith.constant 0 : i32
    %c0_i32_0 = arith.constant 0 : i32
    return %arg0, %c0_i32 : i32, i32
  }
  func.func @transform_3(%arg0: i32) -> (i32, i32, i32) {
    %c0_i32 = arith.constant 0 : i32
    %c0_i32_0 = arith.constant 0 : i32
    %c0_i32_1 = arith.constant 0 : i32
    %c0_i32_2 = arith.constant 0 : i32
    return %c0_i32, %c0_i32_0, %c0_i32_1 : i32, i32, i32
  }
  func.func @transform_4(%arg0: i32) -> (i32, i32) {
    %c0_i32 = arith.constant 0 : i32
    %c0_i32_0 = arith.constant 0 : i32
    return %arg0, %c0_i32 : i32, i32
  }
  func.func @transform_5(%arg0: i32) -> (i32, i32) {
    %c0_i32 = arith.constant 0 : i32
    %c0_i32_0 = arith.constant 0 : i32
    return %arg0, %c0_i32 : i32, i32
  }
}

</mosaic_0001>

<bundles_post_ra>
// kernel: tpu_custom_call.1
= control target key start
LH: loop header
LB: loop body
LE: loop exit
PB: predicated region body
PF: predicated region fallthrough
CT: control target
= control target key end

     0   :  { %11 = vsyncpa [#allocation3], 0  ;;  %s606_s0 = inlined_call_operand.hbm [shape: f32[2,8,32], index: 0, kind: input, shape index: {}]   ;;  %s607_s1 = inlined_call_operand.hbm [shape: f32[2,8,16], index: 1, kind: input, shape index: {}]   ;;  %s608_s2 = inlined_call_operand.vmem [shape: s32[2,8], index: 2, kind: input, shape index: {}]   ;;  %s609_s3 = inlined_call_operand.vmem [shape: f32[1,1,32], index: 3, kind: input, shape index: {}]   ;;  %s610_s4 = inlined_call_operand.hbm [shape: f32[2,8], index: 4, kind: output, shape index: {0}]   ;;  %s611_s5 = inlined_call_operand.hbm [shape: f32[2,16], index: 5, kind: output, shape index: {1}]  }
   0x1   :  { %12 = vsyncpa [#allocation6], 0 }
   0x2   :  { %13 = vsyncpa [#allocation4], 0 }
   0x3   :  { %14 = vsyncpa [#allocation9], 0  ;;  %s498_s18 = smov [#allocation2]   ;;  %s402_s22 = scalar_lea.hbm %s606_s0, 256 }
   0x4   :  { %s20_s19 = sshll.u32 %s498_s18, 4  ;;  %p403_p0 = scmp.ne.s32.totalorder %s606_s0, %s402_s22  ;;  %s21_s19 = int_to_ptr.vmem [resolvable:$true] %s20_s19 }
   0x5   :  { %p406_p1 = scmp.lt.u32.totalorder %s402_s22, %s606_s0 }
   0x7   :  { %p408_p2 = pnand %p406_p1, %p403_p0 }
   0x9   :  { %411 = shalt.err (!%p408_p2)
}
   0xa   :  { %s412_s27 = scalar_lea.vmem %s21_s19, 256  ;;  %p417_p4 = scmp.lt.s32.totalorder %s21_s19, %s21_s19 }
   0xb   :  { %p413_p3 = scmp.ne.s32.totalorder %s21_s19, %s412_s27  ;;  %p418_p5 = scmp.lt.s32.totalorder %s412_s27, %s412_s27 }
   0xd   :  { %p419_p6 = por %p418_p5, %p417_p4 }
   0xf   :  { %p420_p7 = pnand %p419_p6, %p413_p3 }
  0x11   :  { %423 = shalt.err (!%p420_p7)
}
  0x12   :  { %s499_s28 = smov 128   ;;  %s500_s29 = smov 8  }
  0x13   :  { %26 = dma.hbm_to_vmem [thread:$0]  %s606_s0, 256, %s21_s19, [#allocation3], %s499_s28, %s499_s28, %s500_s29  }
  0x14   :  { %s501_s7 = smov [#allocation5]   ;;  %s424_s11 = scalar_lea.hbm %s607_s1, 256 }
  0x15   :  { %s32_s8 = sshll.u32 %s501_s7, 4  ;;  %p425_p8 = scmp.ne.s32.totalorder %s607_s1, %s424_s11  ;;  %s33_s8 = int_to_ptr.vmem [resolvable:$true] %s32_s8 }
  0x16   :  { %p428_p9 = scmp.lt.u32.totalorder %s424_s11, %s607_s1 }
  0x18   :  { %p430_p10 = pnand %p428_p9, %p425_p8 }
  0x1a   :  { %433 = shalt.err (!%p430_p10)
}
  0x1b   :  { %s434_s16 = scalar_lea.vmem %s33_s8, 256  ;;  %p439_p12 = scmp.lt.s32.totalorder %s33_s8, %s33_s8 }
  0x1c   :  { %p435_p11 = scmp.ne.s32.totalorder %s33_s8, %s434_s16  ;;  %p440_p13 = scmp.lt.s32.totalorder %s434_s16, %s434_s16 }
  0x1e   :  { %p441_p0 = por %p440_p13, %p439_p12 }
  0x20   :  { %p442_p1 = pnand %p441_p0, %p435_p11 }
  0x22   :  { %445 = shalt.err (!%p442_p1)
}
  0x23   :  { %38 = dma.hbm_to_vmem [thread:$0]  %s607_s1, 256, %s33_s8, [#allocation6], %s499_s28, %s499_s28, %s500_s29  }
  0x24   :  { %490 = dma.done.wait [#allocation3], 256  }
  0x25   :  { %491 = vsyncadd [#allocation3], 4294967040 }
  0x26   :  { %492 = dma.done.wait [#allocation6], 256  }
  0x27   :  { %493 = vsyncadd [#allocation6], 4294967040  ;;  %v69_v0 = vlaneseq  ;;  %v49_v4 = vld [vmem:[#allocation2] sm:$0xff]  ;;  %vm60_vm0 = vcmask 261120   ;;  %v50_v6 = vld [vmem:[#allocation2 + $0x8] sm:$0xff]  ;;  %v502_v13 = vmov 0.0  }
  0x28   :  { %v365_v5 = vld [vmem:[%s609_s3] ss:$0 sm:$0xff]  ;;  %378 = vmatprep.subr.mxu1 %v502_v13  ;;  %373 = vmatprep.subr.mxu0 %v502_v13  ;;  %vm79_vm2 = vcmask 1041409   ;;  %vm82_vm3 = vcmask 58368   ;;  %v503_v24 = vmov 0   ;;  %v182_v50 = vld [vmem:[#allocation5 + $0x8] sm:$0xff] }
  0x29   :  { %v70_v1 = vand.u32 127, %v69_v0  ;;  %v72_v2 = vshrl.u32 %v69_v0, 7  ;;  %v58_v7 = vmul.f32 %v365_v5, %v49_v4  ;;  %v59_v8 = vmul.f32 %v365_v5, %v50_v6  ;;  %v103_v12 = vld [vmem:[%s608_s2] sm:$0x3]  ;;  %392 = vset.pattern.permute.xlu1 %v503_v24  ;;  %393 = vset.pattern.permute.xlu0 %v503_v24  ;;  %v181_v52 = vld [vmem:[#allocation5] sm:$0xff]  ;;  %s505_s2 = smov [#allocation7]  }
  0x2a   :  { %vm104_vm1 = vcmp.ne.s32.totalorder %v103_v12, 0  ;;  %379 = vmatpush3.msra.mxu1 %v182_v50  ;;  %vm504_vm4 = vmmov 0   ;;  %374 = vmatpush3.msra.mxu0 %v181_v52  ;;  %vm183_vm5 = vcmask 64512   ;;  %s341_s3 = sshll.u32 %s505_s2, 4  ;;  %s342_s3 = int_to_ptr.vmem [resolvable:$true] %s341_s3 }
  0x2b   :  { %v561_v3 = vsub.s32 %v70_v1, %v72_v2  ;;  %v61_v9 = vsel %vm60_vm0, %v58_v7, 0.0  ;;  %v64_v10 = vsel %vm60_vm0, %v59_v8, 0.0  ;;  %v93_v11 = vsub.s32 1, %v72_v2  ;;  %380 = vmatprep.mubr.msk.f32.mxu1 %vm504_vm4, %v502_v13  ;;  %375 = vmatprep.mubr.msk.f32.mxu0 %vm504_vm4, %v502_v13  ;;  %s446_s21 = scalar_lea.vmem %s342_s3, 32  ;;  %p451_p3 = scmp.lt.s32.totalorder %s342_s3, %s342_s3 }
  0x2c   :  { %62 = vadd.xlane.f32.xlu0 %v61_v9  ;;  %v366_v14 = vsel %vm104_vm1, 1.0, %v502_v13  ;;  %v89_v22 = vsub.s32 0, %v72_v2  ;;  %p447_p2 = scmp.ne.s32.totalorder %s342_s3, %s446_s21  ;;  %p452_p4 = scmp.lt.s32.totalorder %s446_s21, %s446_s21 }
  0x2d   :  { %v118_v15 = vrot.slane %v366_v14, %v93_v11 }
  0x2e   :  { %v111_v23 = vrot.slane %v366_v14, %v89_v22  ;;  %p453_p5 = por %p452_p4, %p451_p3 }
  0x30   :  { %65 = vadd.xlane.f32.xlu0 %v64_v10  ;;  %p454_p6 = pnand %p453_p5, %p447_p2 }
  0x46   :  { %120 = vbcast.lane.b32.xlu0 %v118_v15, 256 }
  0xb9   :  { %v63_v16 = vpop.xlane.xlu0 %62 }
  0xba   :  { %v74_v18 = vrot.slane %v63_v16, %v561_v3 }
  0xbd   :  { %v66_v17 = vpop.xlane.xlu0 %65 }
  0xbe   :  { %v78_v19 = vrot.slane %v66_v17, %v561_v3 }
  0xc0   :  { %v80_v20 = vsel %vm79_vm2, %v78_v19, %v74_v18 }
  0xc1   :  { %v83_v21 = vsel %vm82_vm3, %v80_v20, -inf  ;;  %v121_v36 = vpop.permute.xlu0 %120 }
  0xc2   :  { %84 = vmax.xlane.f32.xlu1 %v83_v21 }
  0xd3   :  { %113 = vbcast.lane.b32.xlu1 %v111_v23, 256 }
 0x14f   :  { %v85_v25 = vpop.xlane.xlu1 %84 }
 0x150   :  { %v90_v26 = vrot.slane %v85_v25, %v89_v22  ;;  %v94_v27 = vrot.slane %v85_v25, %v93_v11 }
 0x152   :  { %v97_v28 = vsub.f32 %v63_v16, %v90_v26  ;;  %v98_v29 = vsub.f32 %v66_v17, %v94_v27 }
 0x153   :  { %v114_v32 = vpop.permute.xlu1 %113 }
 0x154   :  { %v99_v30 = vmul.f32 1.442695, %v97_v28  ;;  %v101_v31 = vmul.f32 1.442695, %v98_v29 }
 0x156   :  { %394 = vpow2.f32 %v99_v30 }
 0x157   :  { %396 = vpow2.f32 %v101_v31 }
 0x160   :  { %v395_v33 = vpop.eup %394 }
 0x161   :  { %v124_v34 = vmul.f32 %v395_v33, %v114_v32  ;;  %v397_v35 = vpop.eup %396 }
 0x162   :  { %v125_v37 = vmul.f32 %v397_v35, %v121_v36 }
 0x163   :  { %129 = vperm.xlu1 %392, %v124_v34  }
 0x167   :  { %132 = vperm.xlu1 %392, %v125_v37  }
 0x1e2   :  { %v130_v38 = vpop.permute.xlu1 %129 }
 0x1e3   :  { %v137_v40 = vrot.slane %v130_v38, %v561_v3 }
 0x1e6   :  { %v133_v39 = vpop.permute.xlu1 %132 }
 0x1e7   :  { %v141_v41 = vrot.slane %v133_v39, %v561_v3 }
 0x1e9   :  { %v142_v42 = vsel %vm79_vm2, %v141_v41, %v137_v40 }
 0x1ea   :  { %v144_v43 = vsel %vm82_vm3, %v142_v42, 0.0 }
 0x1eb   :  { %145 = vadd.xlane.f32.xlu1 %v144_v43 }
 0x278   :  { %v146_v44 = vpop.xlane.xlu1 %145 }
 0x279   :  { %v155_v45 = vrot.slane %v146_v44, %v93_v11  ;;  %v151_v46 = vrot.slane %v146_v44, %v89_v22 }
 0x27b   :  { %398 = vrcp.f32 %v155_v45 }
 0x27c   :  { %400 = vrcp.f32 %v151_v46 }
 0x285   :  { %v399_v47 = vpop.eup %398 }
 0x286   :  { %v161_v48 = vmul.f32 %v399_v47, %v125_v37  ;;  %v401_v49 = vpop.eup %400 }
 0x287   :  { %v159_v51 = vmul.f32 %v401_v49, %v124_v34 }
 0x288   :  { %168 = vperm.xlu0 %393, %v161_v48  }
 0x28c   :  { %165 = vperm.xlu0 %393, %v159_v51  }
 0x307   :  { %v169_v53 = vpop.permute.xlu0 %168 }
 0x308   :  { %v177_v54 = vrot.slane %v169_v53, %v561_v3 }
 0x30a   :  { %381 = vmatmul.mubr.msk.f32.vlgmr.msra.gmra.mrb[0].mxu1 %vm183_vm5, %v177_v54 }
 0x30b   :  { %v166_v55 = vpop.permute.xlu0 %165 }
 0x30c   :  { %v173_v56 = vrot.slane %v166_v55, %v561_v3 }
 0x30e   :  { %376 = vmatmul.mubr.msk.f32.vlgmr.msra.gmra.mrb[0].mxu0 %vm183_vm5, %v173_v56  ;;  %v178_v57 = vsel %vm79_vm2, %v177_v54, %v173_v56 }
 0x30f   :  { %180 = vst.msk [vmem:[#allocation7] sm:$0x3] %vm82_vm3, %v178_v57 }
 0x310   :  { %457 = shalt.err (!%p454_p6)
}
 0x311   :  { %s458_s24 = scalar_lea.hbm %s610_s4, 32 }
 0x312   :  { %p459_p7 = scmp.ne.s32.totalorder %s610_s4, %s458_s24  ;;  %p462_p8 = scmp.lt.u32.totalorder %s458_s24, %s610_s4 }
 0x314   :  { %p464_p9 = pnand %p462_p8, %p459_p7 }
 0x316   :  { %467 = shalt.err (!%p464_p9)
}
 0x317   :  { %344 = dma.vmem_to_hbm [thread:$0]  %s342_s3, 32, %s610_s4, [#allocation4]   ;;  %vm333_vm6 = vcmask 123904  }
 0x318   :  { %s506_s6 = smov [#allocation8]  }
 0x319   :  { %s351_s7 = sshll.u32 %s506_s6, 4  ;;  %s352_s7 = int_to_ptr.vmem [resolvable:$true] %s351_s7 }
 0x31a   :  { %s468_s8 = scalar_lea.vmem %s352_s7, 32  ;;  %p473_p11 = scmp.lt.s32.totalorder %s352_s7, %s352_s7 }
 0x31b   :  { %p469_p10 = scmp.ne.s32.totalorder %s352_s7, %s468_s8  ;;  %p474_p12 = scmp.lt.s32.totalorder %s468_s8, %s468_s8 }
 0x31d   :  { %p475_p13 = por %p474_p12, %p473_p11 }
 0x31f   :  { %p476_p0 = pnand %p475_p13, %p469_p10 }
 0x3dd   :  { %v324_v58 = vpop.f32.mrb[0].mxu1 }
 0x3de   :  { %v382_v59 = vpop.f32.mrb[1].mxu1  ;;  %v330_v60 = vrot.slane %v324_v58, 7 }
 0x3e1   :  { %v252_v61 = vpop.f32.mrb[0].mxu0 }
 0x3e2   :  { %v331_v62 = vsel %vm79_vm2, %v330_v60, %v252_v61  ;;  %v377_v63 = vpop.f32.mrb[1].mxu0 }
 0x3e3   :  { %334 = vst.msk [vmem:[#allocation8] sm:$0x3] %vm333_vm6, %v331_v62 }
 0x3e4   :  { %479 = shalt.err (!%p476_p0)
}
 0x3e5   :  { %s480_s10 = scalar_lea.hbm %s611_s5, 32 }
 0x3e6   :  { %p481_p1 = scmp.ne.s32.totalorder %s611_s5, %s480_s10  ;;  %p484_p2 = scmp.lt.u32.totalorder %s480_s10, %s611_s5 }
 0x3e8   :  { %p486_p3 = pnand %p484_p2, %p481_p1 }
 0x3ea   :  { %489 = shalt.err (!%p486_p3)
}
 0x3eb   :  { %354 = dma.vmem_to_hbm [thread:$0]  %s352_s7, 32, %s611_s5, [#allocation9]  }
 0x3ec   :  { %494 = dma.done.wait [#allocation4], 32  }
 0x3ed   :  { %495 = vsyncadd [#allocation4], 4294967264 }
 0x3ee   :  { %496 = dma.done.wait [#allocation9], 32  }
 0x3ef   :  { %497 = vsyncadd [#allocation9], 4294967264 }
 0x3f0   :  { %361 = vsyncpa [#allocation3], 1 }
 0x3f1   :  { %362 = vsyncpa [#allocation6], 1 }
 0x3f2   :  { %363 = vsyncpa [#allocation4], 1 }
 0x3f3   :  { %364 = vsyncpa [#allocation9], 1 }

</bundles_post_ra>
